<compile_context>
chip_gen: v7x
topology: tpu7x:2x2x1
jax: 0.10.0
libtpu: 0.0.40
codegen_flags: <defaults>
</compile_context>

<pallas_src>
import functools

import jax
import jax.numpy as jnp
from jax.experimental import pallas as pl
from jax.experimental.pallas import tpu as pltpu

BN_EPS = 1e-5
LANE = 128
SUBLANE_BF16 = 16
TM_BASE = 512  # row tile; bounds VMEM independently of N and gives a parallel grid axis


def _round_up(x, m):
    return (x + m - 1) // m * m


def _pick_tk():
    """Reduction tile: 256 fills the v6e/v7x 256-wide MXU; v5e/v4 MXUs are 128-wide."""
    try:
        kind = jax.devices()[0].device_kind.lower()
    except Exception:
        return 128
    if any(v in kind for v in ("v2", "v3", "v4", "v5")):
        return 128
    return 256


def _gcn_agg_kernel(a_ref, h_ref, y_ref, s1_ref, s2_ref):
    """One (row-tile m, K-slab k) step of y = A_hat @ h, plus partial BN stats.

    a_ref:  (TM, TK)      bf16  A_hat tile
    h_ref:  (TK, OD_pad)  bf16  matching rows of h = x @ W^T
    y_ref:  (TM, OD_pad)  f32   resident accumulator == output (lane-dense stores)
    s1/s2:  (8, OD_pad)   f32   per-row-tile partial sums of y and y*y
    """
    k = pl.program_id(1)

    @pl.when(k == 0)
    def _init():
        y_ref[...] = jnp.zeros_like(y_ref)

    y_ref[...] += jnp.dot(a_ref[...], h_ref[...],
                          preferred_element_type=jnp.float32)

    @pl.when(k == pl.num_programs(1) - 1)
    def _partial_stats():
        y = y_ref[...]
        # Partial sublane reduction: (TM, OD) -> (TM//8, 8, OD) -> sum over tile groups.
        y3 = y.reshape(y.shape[0] // 8, 8, y.shape[1])
        s1_ref[...] = jnp.sum(y3, axis=0)
        s2_ref[...] = jnp.sum(y3 * y3, axis=0)


def _bn_relu_kernel(y_ref, s1_ref, s2_ref, gamma_ref, beta_ref, o_ref, *, n_real):
    """Training-mode BatchNorm1d (batch statistics over the n_real nodes) + ReLU."""
    inv_n = jnp.float32(1.0 / n_real)
    mean = jnp.sum(s1_ref[...], axis=0, keepdims=True) * inv_n
    ex2 = jnp.sum(s2_ref[...], axis=0, keepdims=True) * inv_n
    # Single-pass variance can go slightly negative in f32; clamp before rsqrt.
    var = jnp.maximum(ex2 - mean * mean, 0.0)
    # Fused affine: scale = gamma * rsqrt(var+eps); shift = beta - mean*scale (one FMA/elem).
    scale = gamma_ref[...] * jax.lax.rsqrt(var + BN_EPS)
    shift = beta_ref[...] - mean * scale
    o_ref[...] = jnp.maximum(y_ref[...] * scale + shift, 0.0).astype(o_ref.dtype)


def build_normalized_adjacency(edge_index, n):
    """Dense GCN-normalized adjacency D^{-1/2} (A + remaining self-loops) D^{-1/2}.

    Kept outside the kernel so a static graph can be built once and reused across
    layers / training steps.
    """
    src, dst = edge_index[0], edge_index[1]
    a_in = jnp.zeros((n, n), jnp.float32).at[dst, src].add(1.0)
    idx = jnp.arange(n)
    diag = a_in[idx, idx]
    a_in = a_in.at[idx, idx].set(jnp.where(diag > 0, diag, 1.0))
    deg = a_in.sum(axis=1)
    d_inv_sqrt = jnp.where(deg > 0, jax.lax.rsqrt(deg), 0.0)
    return d_inv_sqrt[:, None] * a_in * d_inv_sqrt[None, :]


def conv_layer_forward(x, edge_index, weight, bias, gamma, beta,
                       a_hat=None, tm=None, tk=None):
    """x: [N, in_dim] f32; edge_index: [2, E] int32; weight: [out_dim, in_dim]."""
    n, in_dim = x.shape
    out_dim = weight.shape[0]
    if a_hat is None:
        a_hat = build_normalized_adjacency(edge_index, n)

    # GCNConv bias cancels exactly under training-mode BatchNorm (module default:
    # batchnorm=True); see TODO at top for the batchnorm=False / eval-mode path.
    del bias

    if tk is None:
        tk = min(_pick_tk(), _round_up(n, LANE))
    if tm is None:
        tm = min(TM_BASE, _round_up(n, SUBLANE_BF16))
    assert tk % LANE == 0 and tm % SUBLANE_BF16 == 0

    n_rows = _round_up(n, tm)           # row padding decoupled from K padding
    n_cols = _round_up(n, tk)
    od_pad = _round_up(out_dim, LANE)   # lane-dense output -> unmasked stores
    mt, kt = n_rows // tm, n_cols // tk

    # W folded into the pipeline: h = x @ W^T once (negligible vs O(N^2) aggregation).
    h = x.astype(jnp.float32) @ weight.T.astype(jnp.float32)
    # bf16 on the big operands halves HBM traffic / doubles MXU rate; accumulate f32.
    h_p = jnp.zeros((n_cols, od_pad), jnp.bfloat16).at[:n, :out_dim].set(
        h.astype(jnp.bfloat16))
    a_p = jnp.zeros((n_rows, n_cols), jnp.bfloat16).at[:n, :n].set(
        a_hat[:n, :n].astype(jnp.bfloat16))
    g_p = jnp.zeros((1, od_pad), jnp.float32).at[:, :out_dim].set(gamma.reshape(1, -1))
    b_p = jnp.zeros((1, od_pad), jnp.float32).at[:, :out_dim].set(beta.reshape(1, -1))

    # VMEM footprint: double-buffered A_hat / h windows + resident y + stats windows.
    agg_vmem = (2 * tm * tk * 2          # A_hat slabs (bf16)
                + 2 * tk * od_pad * 2    # h slabs (bf16)
                + 2 * tm * od_pad * 4    # resident output window (f32)
                + 4 * 8 * od_pad * 4)    # s1/s2 windows
    agg_vmem = min(48 * 1024 * 1024, max(4 * 1024 * 1024, 2 * agg_vmem))

    y_pre, s1, s2 = pl.pallas_call(
        _gcn_agg_kernel,
        out_shape=(
            jax.ShapeDtypeStruct((n_rows, od_pad), jnp.float32),
            jax.ShapeDtypeStruct((8 * mt, od_pad), jnp.float32),
            jax.ShapeDtypeStruct((8 * mt, od_pad), jnp.float32),
        ),
        grid_spec=pltpu.PrefetchScalarGridSpec(
            num_scalar_prefetch=0,
            grid=(mt, kt),
            in_specs=[
                pl.BlockSpec((tm, tk), lambda m, k: (m, k)),       # A_hat tile
                pl.BlockSpec((tk, od_pad), lambda m, k: (k, 0)),   # matching h rows
            ],
            out_specs=(
                pl.BlockSpec((tm, od_pad), lambda m, k: (m, 0)),   # resident across K
                pl.BlockSpec((8, od_pad), lambda m, k: (m, 0)),    # partial s1
                pl.BlockSpec((8, od_pad), lambda m, k: (m, 0)),    # partial s2
            ),
        ),
        compiler_params=pltpu.CompilerParams(
            # Row tiles are independent ("parallel" -> v7x megacore sharding);
            # K is a reduction with a resident accumulator ("arbitrary", last).
            dimension_semantics=("parallel", "arbitrary"),
            vmem_limit_bytes=agg_vmem,
        ),
    )(a_p, h_p)

    out_p = pl.pallas_call(
        functools.partial(_bn_relu_kernel, n_real=n),
        out_shape=jax.ShapeDtypeStruct((n_rows, od_pad), jnp.float32),
        grid_spec=pltpu.PrefetchScalarGridSpec(
            num_scalar_prefetch=0,
            grid=(mt,),
            in_specs=[
                pl.BlockSpec((tm, od_pad), lambda m: (m, 0)),
                pl.BlockSpec((8 * mt, od_pad), lambda m: (0, 0)),
                pl.BlockSpec((8 * mt, od_pad), lambda m: (0, 0)),
                pl.BlockSpec((1, od_pad), lambda m: (0, 0)),
                pl.BlockSpec((1, od_pad), lambda m: (0, 0)),
            ],
            out_specs=pl.BlockSpec((tm, od_pad), lambda m: (m, 0)),
        ),
        compiler_params=pltpu.CompilerParams(
            dimension_semantics=("parallel",),
        ),
    )(y_pre, s1, s2, g_p, b_p)

    return out_p[:n, :out_dim]


def reference_forward(x, edge_index, weight, bias, gamma, beta):
    """Pure-JAX reference of GCNConv -> BatchNorm1d(train) -> ReLU (bias included)."""
    n = x.shape[0]
    a_hat = build_normalized_adjacency(edge_index, n)
    y = a_hat @ (x @ weight.T) + bias[None, :]
    mean = y.mean(axis=0, keepdims=True)
    var = ((y - mean) ** 2).mean(axis=0, keepdims=True)
    y = (y - mean) * jax.lax.rsqrt(var + BN_EPS) * gamma[None, :] + beta[None, :]
    return jnp.maximum(y, 0.0)


def _run_case(key, num_nodes, num_edges, in_dim, out_dim, tm=None, tk=None):
    k_x, k_e, k_w, k_b, k_g, k_be = jax.random.split(key, 6)
    x = jax.random.normal(k_x, (num_nodes, in_dim), dtype=jnp.float32)
    edge_index = jax.random.randint(k_e, (2, num_edges), 0, num_nodes, dtype=jnp.int32)
    weight = jax.random.normal(k_w, (out_dim, in_dim), dtype=jnp.float32) / jnp.sqrt(
        jnp.float32(in_dim))
    bias = 0.5 * jax.random.normal(k_b, (out_dim,), dtype=jnp.float32)   # nonzero: exercises
    gamma = 1.0 + 0.1 * jax.random.normal(k_g, (out_dim,), dtype=jnp.float32)  # BN cancellation
    beta = 0.1 * jax.random.normal(k_be, (out_dim,), dtype=jnp.float32)

    out = conv_layer_forward(x, edge_index, weight, bias, gamma, beta, tm=tm, tk=tk)
    out = jax.block_until_ready(out)
    ref = reference_forward(x, edge_index, weight, bias, gamma, beta)
    assert out.shape == (num_nodes, out_dim)
    # bf16 quantization of A_hat / h -> a few e-3 relative error before BN rescaling.
    assert jnp.allclose(out, ref, atol=5e-2, rtol=5e-2), "mismatch vs reference"


if __name__ == "__main__":
    key = jax.random.PRNGKey(0)
    k1, k2 = jax.random.split(key)

    # Case 1: toy size (single tile on every grid axis).
    _run_case(k1, num_nodes=16, num_edges=40, in_dim=8, out_dim=32)

    # Case 2: forces multiple row tiles and multiple K slabs (mt > 1, kt > 1).
    _run_case(k2, num_nodes=160, num_edges=400, in_dim=8, out_dim=32, tm=32, tk=128)

    print("KERNEL_OK")
</pallas_src>

<mosaic_0001>
module attributes {stable_mosaic.version = 11 : i64} {
  func.func @_gcn_agg_kernel(%arg0: i32, %arg1: i32, %arg2: memref<16x128xbf16, #tpu.memory_space<vmem>>, %arg3: memref<128x128xbf16, #tpu.memory_space<vmem>>, %arg4: memref<16x128xf32, #tpu.memory_space<vmem>>, %arg5: memref<8x128xf32, #tpu.memory_space<vmem>>, %arg6: memref<8x128xf32, #tpu.memory_space<vmem>>) attributes {dimension_semantics = [#tpu.dimension_semantics<parallel>, #tpu.dimension_semantics<arbitrary>], iteration_bounds = array<i64: 1, 1>, scalar_prefetch = 0 : i64, scratch_operands = 0 : i64, tpu.core_type = #tpu.core_type<tc>, window_params = [{transform_indices = @transform_0, window_bounds = array<i64: 16, 128>}, {transform_indices = @transform_1, window_bounds = array<i64: 128, 128>}, {transform_indices = @transform_2, window_bounds = array<i64: 16, 128>}, {transform_indices = @transform_3, window_bounds = array<i64: 8, 128>}, {transform_indices = @transform_4, window_bounds = array<i64: 8, 128>}]} {
    %c0_i32 = arith.constant 0 : i32
    %0 = arith.cmpi eq, %arg1, %c0_i32 : i32
    %1 = arith.extui %0 : i1 to i32
    %c0_i32_0 = arith.constant 0 : i32
    %2 = arith.cmpi ne, %1, %c0_i32_0 : i32
    scf.if %2 {
      %cst_10 = arith.constant 0.000000e+00 : f32
      %12 = vector.broadcast %cst_10 : f32 to vector<16x128xf32>
      %c0_11 = arith.constant 0 : index
      %c0_12 = arith.constant 0 : index
      %13 = vector.load %arg4[%c0_11, %c0_12] : memref<16x128xf32, #tpu.memory_space<vmem>>, vector<16x128xf32>
      tpu.vector_store %arg4[%c0_11, %c0_12], %12 {strides = array<i32>} : memref<16x128xf32, #tpu.memory_space<vmem>>, vector<16x128xf32>,
    } else {
    }
    %c0 = arith.constant 0 : index
    %c0_1 = arith.constant 0 : index
    %3 = vector.load %arg4[%c0, %c0_1] : memref<16x128xf32, #tpu.memory_space<vmem>>, vector<16x128xf32>
    %c0_2 = arith.constant 0 : index
    %c0_3 = arith.constant 0 : index
    %4 = vector.load %arg2[%c0_2, %c0_3] : memref<16x128xbf16, #tpu.memory_space<vmem>>, vector<16x128xbf16>
    %c0_4 = arith.constant 0 : index
    %c0_5 = arith.constant 0 : index
    %5 = vector.load %arg3[%c0_4, %c0_5] : memref<128x128xbf16, #tpu.memory_space<vmem>>, vector<128x128xbf16>
    %cst = arith.constant dense<0.000000e+00> : vector<16x128xf32>
    %6 = tpu.matmul %4, %5, %cst {dimension_numbers = #tpu.dot_dimension_numbers<[1], [0], [0], [1], [0, 0, 1, 1], [], []>} : vector<16x128xbf16>, vector<128x128xbf16>, vector<16x128xf32> -> vector<16x128xf32>
    %7 = arith.addf %3, %6 : vector<16x128xf32>
    %c0_6 = arith.constant 0 : index
    %c0_7 = arith.constant 0 : index
    %8 = vector.load %arg4[%c0_6, %c0_7] : memref<16x128xf32, #tpu.memory_space<vmem>>, vector<16x128xf32>
    tpu.vector_store %arg4[%c0_6, %c0_7], %7 {strides = array<i32>} : memref<16x128xf32, #tpu.memory_space<vmem>>, vector<16x128xf32>,
    %c0_i32_8 = arith.constant 0 : i32
    %9 = arith.cmpi eq, %arg1, %c0_i32_8 : i32
    %10 = arith.extui %9 : i1 to i32
    %c0_i32_9 = arith.constant 0 : i32
    %11 = arith.cmpi ne, %10, %c0_i32_9 : i32
    scf.if %11 {
      %c0_10 = arith.constant 0 : index
      %c0_11 = arith.constant 0 : index
      %12 = vector.load %arg4[%c0_10, %c0_11] : memref<16x128xf32, #tpu.memory_space<vmem>>, vector<16x128xf32>
      %13 = vector.shape_cast %12 : vector<16x128xf32> to vector<2x8x128xf32>
      %cst_12 = arith.constant dense<0.000000e+00> : vector<8x128xf32>
      %14 = vector.multi_reduction <add>, %13, %cst_12 [0] : vector<2x8x128xf32> to vector<8x128xf32>
      %c0_13 = arith.constant 0 : index
      %c0_14 = arith.constant 0 : index
      %15 = vector.load %arg5[%c0_13, %c0_14] : memref<8x128xf32, #tpu.memory_space<vmem>>, vector<8x128xf32>
      tpu.vector_store %arg5[%c0_13, %c0_14], %14 {strides = array<i32>} : memref<8x128xf32, #tpu.memory_space<vmem>>, vector<8x128xf32>,
      %16 = arith.mulf %13, %13 : vector<2x8x128xf32>
      %cst_15 = arith.constant dense<0.000000e+00> : vector<8x128xf32>
      %17 = vector.multi_reduction <add>, %16, %cst_15 [0] : vector<2x8x128xf32> to vector<8x128xf32>
      %c0_16 = arith.constant 0 : index
      %c0_17 = arith.constant 0 : index
      %18 = vector.load %arg6[%c0_16, %c0_17] : memref<8x128xf32, #tpu.memory_space<vmem>>, vector<8x128xf32>
      tpu.vector_store %arg6[%c0_16, %c0_17], %17 {strides = array<i32>} : memref<8x128xf32, #tpu.memory_space<vmem>>, vector<8x128xf32>,
    } else {
    }
    return
  }
  func.func @transform_0(%arg0: i32, %arg1: i32) -> (i32, i32) {
    %c0_i32 = arith.constant 0 : i32
    return %arg0, %arg1 : i32, i32
  }
  func.func @transform_1(%arg0: i32, %arg1: i32) -> (i32, i32) {
    %c0_i32 = arith.constant 0 : i32
    %c0_i32_0 = arith.constant 0 : i32
    return %arg1, %c0_i32 : i32, i32
  }
  func.func @transform_2(%arg0: i32, %arg1: i32) -> (i32, i32) {
    %c0_i32 = arith.constant 0 : i32
    %c0_i32_0 = arith.constant 0 : i32
    return %arg0, %c0_i32 : i32, i32
  }
  func.func @transform_3(%arg0: i32, %arg1: i32) -> (i32, i32) {
    %c0_i32 = arith.constant 0 : i32
    %c0_i32_0 = arith.constant 0 : i32
    return %arg0, %c0_i32 : i32, i32
  }
  func.func @transform_4(%arg0: i32, %arg1: i32) -> (i32, i32) {
    %c0_i32 = arith.constant 0 : i32
    %c0_i32_0 = arith.constant 0 : i32
    return %arg0, %c0_i32 : i32, i32
  }
}

</mosaic_0001>

<bundles_post_ra>
// kernel: tpu_custom_call.1
= control target key start
LH: loop header
LB: loop body
LE: loop exit
PB: predicated region body
PF: predicated region fallthrough
CT: control target
= control target key end

     0   :  { %10 = vsyncpa [#allocation3], 0  ;;  %s505_s0 = inlined_call_operand.hbm [shape: bf16[16,128], index: 0, kind: input, shape index: {}]   ;;  %s506_s1 = inlined_call_operand.hbm [shape: bf16[128,128], index: 1, kind: input, shape index: {}]   ;;  %s507_s2 = inlined_call_operand.hbm [shape: f32[16,128], index: 2, kind: output, shape index: {0}]   ;;  %s508_s3 = inlined_call_operand.hbm [shape: f32[8,128], index: 3, kind: output, shape index: {1}]   ;;  %s509_s4 = inlined_call_operand.hbm [shape: f32[8,128], index: 4, kind: output, shape index: {2}]  }
   0x1   :  { %11 = vsyncpa [#allocation6], 0 }
   0x2   :  { %12 = vsyncpa [#allocation4], 0 }
   0x3   :  { %13 = vsyncpa [#allocation9], 0  ;;  %s402_s15 = smov [#allocation2]   ;;  %s284_s19 = scalar_lea.hbm %s505_s0, 128 }
   0x4   :  { %s19_s16 = sshll.u32 %s402_s15, 4  ;;  %p285_p0 = scmp.ne.s32.totalorder %s505_s0, %s284_s19  ;;  %s20_s16 = int_to_ptr.vmem [resolvable:$true] %s19_s16 }
   0x5   :  { %p288_p1 = scmp.lt.u32.totalorder %s284_s19, %s505_s0 }
   0x7   :  { %p290_p2 = pnand %p288_p1, %p285_p0 }
   0x9   :  { %293 = shalt.err (!%p290_p2)
}
   0xa   :  { %s294_s24 = scalar_lea.vmem %s20_s16, 128  ;;  %p299_p4 = scmp.lt.s32.totalorder %s20_s16, %s20_s16 }
   0xb   :  { %p295_p3 = scmp.ne.s32.totalorder %s20_s16, %s294_s24  ;;  %p300_p5 = scmp.lt.s32.totalorder %s294_s24, %s294_s24 }
   0xd   :  { %p301_p6 = por %p300_p5, %p299_p4 }
   0xf   :  { %p302_p7 = pnand %p301_p6, %p295_p3 }
  0x11   :  { %305 = shalt.err (!%p302_p7)
}
  0x12   :  { %s403_s25 = smov 64   ;;  %s404_s26 = smov 4  }
  0x13   :  { %25 = dma.hbm_to_vmem [thread:$0]  %s505_s0, 128, %s20_s16, [#allocation3], %s403_s25, %s403_s25, %s404_s26  }
  0x14   :  { %s405_s29 = smov [#allocation5]   ;;  %s306_s7 = scalar_lea.hbm %s506_s1, 1024 }
  0x15   :  { %s31_s30 = sshll.u32 %s405_s29, 4  ;;  %p307_p8 = scmp.ne.s32.totalorder %s506_s1, %s306_s7  ;;  %s32_s30 = int_to_ptr.vmem [resolvable:$true] %s31_s30 }
  0x16   :  { %p310_p9 = scmp.lt.u32.totalorder %s306_s7, %s506_s1 }
  0x18   :  { %p312_p10 = pnand %p310_p9, %p307_p8 }
  0x1a   :  { %315 = shalt.err (!%p312_p10)
}
  0x1b   :  { %s316_s12 = scalar_lea.vmem %s32_s30, 1024  ;;  %p321_p12 = scmp.lt.s32.totalorder %s32_s30, %s32_s30 }
  0x1c   :  { %p317_p11 = scmp.ne.s32.totalorder %s32_s30, %s316_s12  ;;  %p322_p13 = scmp.lt.s32.totalorder %s316_s12, %s316_s12 }
  0x1e   :  { %p323_p0 = por %p322_p13, %p321_p12 }
  0x20   :  { %p324_p1 = pnand %p323_p0, %p317_p11 }
  0x22   :  { %327 = shalt.err (!%p324_p1)
}
  0x23   :  { %37 = dma.hbm_to_vmem [thread:$0]  %s506_s1, 1024, %s32_s30, [#allocation6], %s403_s25, %s403_s25, %s404_s26  }
  0x24   :  { %394 = dma.done.wait [#allocation3], 128  }
  0x25   :  { %395 = vsyncadd [#allocation3], 4294967168 }
  0x26   :  { %396 = dma.done.wait [#allocation6], 1024  }
  0x27   :  { %397 = vsyncadd [#allocation6], 4294966272  ;;  %v406_v0 = vmov 0.0   ;;  %vm407_vm0 = vmmov 0   ;;  %v275_v1 = vld [vmem:[#allocation5] sm:$0xff]   ;;  %v276_v2 = vld [vmem:[#allocation5 + $0x8] sm:$0xff]  }
  0x28   :  { %244 = vmatprep.subr.bf16.mxu0 %v406_v0  ;;  %260 = vmatprep.mubr.msk.bf16.mxu0 %vm407_vm0, %v406_v0  ;;  %v277_v3 = vld [vmem:[#allocation5 + $0x10] sm:$0xff]   ;;  %v278_v4 = vld [vmem:[#allocation5 + $0x18] sm:$0xff]   ;;  %v279_v5 = vld [vmem:[#allocation5 + $0x20] sm:$0xff]   ;;  %s408_s1 = smov [#allocation7]   ;;  %s409_s15 = smov [#allocation8]  }
  0x29   :  { %245 = vmatpush3.bf16.msra.mxu0 %v275_v1  ;;  %v280_v6 = vld [vmem:[#allocation5 + $0x28] sm:$0xff]   ;;  %v281_v7 = vld [vmem:[#allocation5 + $0x30] sm:$0xff]   ;;  %v282_v8 = vld [vmem:[#allocation5 + $0x38] sm:$0xff]   ;;  %s186_s14 = sshll.u32 %s408_s1, 4  ;;  %s199_s16 = sshll.u32 %s409_s15, 4  ;;  %s187_s14 = int_to_ptr.vmem [resolvable:$true] %s186_s14  ;;  %s462_s16 = int_to_ptr.vmem [resolvable:$true] %s199_s16 }
  0x2a   :  { %246 = vmatprep.subr.bf16.mxu0 %v406_v0  ;;  %v283_v9 = vld [vmem:[#allocation2] sm:$0xff]   ;;  %s410_s17 = smov [#allocation10]   ;;  %s328_s19 = scalar_lea.vmem %s187_s14, 256 }
  0x2b   :  { %s209_s18 = sshll.u32 %s410_s17, 4  ;;  %p329_p2 = scmp.ne.s32.totalorder %s187_s14, %s328_s19  ;;  %s210_s18 = int_to_ptr.vmem [resolvable:$true] %s209_s18 }
  0x2c   :  { %p333_p3 = scmp.lt.s32.totalorder %s187_s14, %s187_s14  ;;  %p334_p4 = scmp.lt.s32.totalorder %s328_s19, %s328_s19 }
  0x2d   :  { %247 = vmatpush3.bf16.msra.mxu0 %v276_v2 }
  0x2e   :  { %248 = vmatprep.subr.bf16.mxu0 %v406_v0  ;;  %p335_p5 = por %p334_p4, %p333_p3 }
  0x30   :  { %p336_p6 = pnand %p335_p5, %p329_p2 }
  0x31   :  { %249 = vmatpush3.bf16.msra.mxu0 %v277_v3 }
  0x32   :  { %250 = vmatprep.subr.bf16.mxu0 %v406_v0 }
  0x35   :  { %251 = vmatpush3.bf16.msra.mxu0 %v278_v4 }
  0x36   :  { %252 = vmatprep.subr.bf16.mxu0 %v406_v0 }
  0x39   :  { %253 = vmatpush3.bf16.msra.mxu0 %v279_v5 }
  0x3a   :  { %254 = vmatprep.subr.bf16.mxu0 %v406_v0 }
  0x3d   :  { %255 = vmatpush3.bf16.msra.mxu0 %v280_v6 }
  0x3e   :  { %256 = vmatprep.subr.bf16.mxu0 %v406_v0 }
  0x41   :  { %257 = vmatpush3.bf16.msra.mxu0 %v281_v7 }
  0x42   :  { %258 = vmatprep.subr.bf16.mxu0 %v406_v0 }
  0x45   :  { %259 = vmatpush3.bf16.msra.mxu0 %v282_v8 }
  0x48   :  { %261 = vmatmul.mubr.bf16.vlgmr.msra.gmra.mrb[0].mxu0 %v283_v9 }
 0x11b   :  { %v159_v10 = vpop.f32.mrb[0].mxu0 }
 0x11c   :  { %v262_v11 = vpop.f32.mrb[1].mxu0  ;;  %168 = vst [vmem:[#allocation7] sm:$0xff] %v159_v10  ;;  %v177_v15 = vmul.f32 %v159_v10, %v159_v10 }
 0x11d   :  { %v162_v12 = vpop.f32.mrb[2].mxu0 }
 0x11e   :  { %v263_v13 = vpop.f32.mrb[3].mxu0  ;;  %169 = vst [vmem:[#allocation7 + $0x8] sm:$0xff] %v162_v12  ;;  %v175_v14 = vadd.f32 %v162_v12, %v159_v10  ;;  %v178_v16 = vmul.f32 %v162_v12, %v162_v12 }
 0x11f   :  { %339 = shalt.err (!%p336_p6)
}
 0x120   :  { %s340_s22 = scalar_lea.hbm %s507_s2, 256 }
 0x121   :  { %p341_p7 = scmp.ne.s32.totalorder %s507_s2, %s340_s22  ;;  %p344_p8 = scmp.lt.u32.totalorder %s340_s22, %s507_s2 }
 0x123   :  { %p346_p9 = pnand %p344_p8, %p341_p7 }
 0x125   :  { %349 = shalt.err (!%p346_p9)
}
 0x126   :  { %s411_s27 = smov 128   ;;  %s412_s28 = smov 8   ;;  %176 = vst [vmem:[#allocation8] sm:$0xff] %v175_v14  ;;  %v179_v17 = vadd.f32 %v178_v16, %v177_v15 }
 0x127   :  { %192 = dma.vmem_to_hbm [thread:$0]  %s187_s14, 256, %s507_s2, [#allocation4], %s411_s27, %s411_s27, %s412_s28  }
 0x128   :  { %s350_s5 = scalar_lea.vmem %s462_s16, 128  ;;  %p355_p11 = scmp.lt.s32.totalorder %s462_s16, %s462_s16 }
 0x129   :  { %p351_p10 = scmp.ne.s32.totalorder %s462_s16, %s350_s5  ;;  %p356_p12 = scmp.lt.s32.totalorder %s350_s5, %s350_s5 }
 0x12b   :  { %p357_p13 = por %p356_p12, %p355_p11 }
 0x12d   :  { %p358_p0 = pnand %p357_p13, %p351_p10 }
 0x12f   :  { %361 = shalt.err (!%p358_p0)
}
 0x130   :  { %s362_s8 = scalar_lea.hbm %s508_s3, 128 }
 0x131   :  { %p363_p1 = scmp.ne.s32.totalorder %s508_s3, %s362_s8  ;;  %p366_p2 = scmp.lt.u32.totalorder %s362_s8, %s508_s3 }
 0x133   :  { %p368_p3 = pnand %p366_p2, %p363_p1 }
 0x135   :  { %371 = shalt.err (!%p368_p3)
}
 0x136   :  { %202 = dma.vmem_to_hbm [thread:$0]  %s462_s16, 128, %s508_s3, [#allocation9]   ;;  %180 = vst [vmem:[#allocation10] sm:$0xff] %v179_v17 }
 0x137   :  { %s372_s13 = scalar_lea.vmem %s210_s18, 128  ;;  %p377_p5 = scmp.lt.s32.totalorder %s210_s18, %s210_s18 }
 0x138   :  { %p373_p4 = scmp.ne.s32.totalorder %s210_s18, %s372_s13  ;;  %p378_p6 = scmp.lt.s32.totalorder %s372_s13, %s372_s13 }
 0x13a   :  { %p379_p7 = por %p378_p6, %p377_p5 }
 0x13c   :  { %p380_p8 = pnand %p379_p7, %p373_p4 }
 0x13e   :  { %383 = shalt.err (!%p380_p8)
}
 0x13f   :  { %s384_s15 = scalar_lea.hbm %s509_s4, 128 }
 0x140   :  { %p385_p9 = scmp.ne.s32.totalorder %s509_s4, %s384_s15  ;;  %p388_p10 = scmp.lt.u32.totalorder %s384_s15, %s509_s4 }
 0x142   :  { %p390_p11 = pnand %p388_p10, %p385_p9 }
 0x144   :  { %393 = shalt.err (!%p390_p11)
}
 0x145   :  { %212 = dma.vmem_to_hbm [thread:$0]  %s210_s18, 128, %s509_s4, [#allocation9]  }
 0x146   :  { %398 = dma.done.wait [#allocation4], 256  }
 0x147   :  { %399 = vsyncadd [#allocation4], 4294967040 }
 0x148   :  { %400 = dma.done.wait [#allocation9], 256  }
 0x149   :  { %401 = vsyncadd [#allocation9], 4294967040 }
 0x14a   :  { %222 = vsyncpa [#allocation3], 1 }
 0x14b   :  { %223 = vsyncpa [#allocation6], 1 }
 0x14c   :  { %224 = vsyncpa [#allocation4], 1 }
 0x14d   :  { %225 = vsyncpa [#allocation9], 1 }

</bundles_post_ra>
